<compile_context>
chip_gen: v6e
topology: v6e:2x2x1
jax: 0.10.0
libtpu: 0.0.40
codegen_flags: <defaults>
</compile_context>

<pallas_src>
import functools
import math

import numpy as np
import jax
import jax.numpy as jnp
from jax.experimental import pallas as pl
from jax.experimental.pallas import tpu as pltpu


# ----------------------------------------------------------------------------
# Tiling configuration
# ----------------------------------------------------------------------------
_LANES = 512                        # preferred lane-dense width (mult of 128)
_MAX_BLOCK_ROWS = 2048              # 2048 x 512 f32 = 4 MiB per input block
_PYR_BLOCK_BYTES = 4 * 1024 * 1024  # target bytes per (Y,T) plane-block
_MAX_PLANES_PER_BLOCK = 16          # bound for the unrolled per-plane loop


def _round_up(x: int, m: int) -> int:
    return ((x + m - 1) // m) * m


def _vmem_limit(need_bytes: int) -> int:
    """Scoped-VMEM limit sized to actual need (+headroom), safe on v7x (64MiB)."""
    return int(min(64 * 1024 * 1024, max(need_bytes + 8 * 1024 * 1024,
                                         16 * 1024 * 1024)))


# ----------------------------------------------------------------------------
# Bilinear (align_corners=True) interpolation matrices  (cached, built once)
# ----------------------------------------------------------------------------
@functools.lru_cache(maxsize=None)
def _bilinear_weights(out_size: int, in_size: int) -> np.ndarray:
    """Row-interpolation matrix (out_size, in_size) matching
    F.interpolate(mode='bilinear', align_corners=True) along one axis."""
    W = np.zeros((out_size, in_size), dtype=np.float32)
    if out_size == 1:
        W[0, 0] = 1.0
        return W
    scale = (in_size - 1) / (out_size - 1)
    for i in range(out_size):
        src = i * scale
        lo = min(int(math.floor(src)), in_size - 1)
        hi = min(lo + 1, in_size - 1)
        frac = src - lo
        W[i, lo] += 1.0 - frac
        W[i, hi] += frac
    return W


@functools.lru_cache(maxsize=None)
def _bilinear_weights_t(out_size: int, in_size: int) -> np.ndarray:
    """Pre-transposed width matrix (in_size, out_size): no in-kernel transpose."""
    return np.ascontiguousarray(_bilinear_weights(out_size, in_size).T)


# ----------------------------------------------------------------------------
# Kernels
# ----------------------------------------------------------------------------
def _pyr_level_kernel(y_ref, t_ref, wh_ref, wwt_ref, o_ref, acc_ref):
    """Accumulates sum(|Y - bilinear_resize(T)|) over a grid of plane-blocks.

    y_ref:   (B, Ho, Wo)   block of prediction planes (f32)
    t_ref:   (B*Hi, Wi)    block of target planes, stacked along rows (f32)
    wh_ref:  (Ho, Hi)      height interpolation matrix
    wwt_ref: (Wi, Wo)      width interpolation matrix (pre-transposed)
    acc_ref: (Ho, Wo) VMEM element-wise accumulator (single RMW per step)
    """
    i = pl.program_id(0)

    @pl.when(i == 0)
    def _():
        acc_ref[...] = jnp.zeros_like(acc_ref)

    B, Ho, Wo = y_ref.shape
    BHi, _ = t_ref.shape
    Hi = BHi // B

    # bf16 MXU inputs (cast in-kernel -> no extra HBM pass), f32 accumulation.
    wh_bf = wh_ref[...].astype(jnp.bfloat16)
    wwt_bf = wwt_ref[...].astype(jnp.bfloat16)
    t_bf = t_ref[...].astype(jnp.bfloat16)

    # Width resize for all B planes in one MXU matmul (M = B*Hi fills the MXU).
    a_all = jnp.dot(t_bf, wwt_bf,
                    preferred_element_type=jnp.float32)          # (B*Hi, Wo)
    a_all = a_all.astype(jnp.bfloat16)

    # Height resize + L1 per plane; accumulate in registers, one scratch RMW.
    acc = jnp.zeros((Ho, Wo), jnp.float32)
    for b in range(B):
        a_b = a_all[b * Hi:(b + 1) * Hi, :]                      # (Hi, Wo)
        r_b = jnp.dot(wh_bf, a_b, preferred_element_type=jnp.float32)
        acc = acc + jnp.abs(y_ref[b] - r_b)
    acc_ref[...] += acc

    @pl.when(i == pl.num_programs(0) - 1)
    def _():
        o_ref[...] = jnp.sum(acc_ref[...]).reshape(1, 1)


def _l1_sum_kernel(y_ref, t_ref, o_ref, acc_ref):
    """sum(|Y - T|) over a lane-dense flat layout (zero padding is neutral)."""
    i = pl.program_id(0)

    @pl.when(i == 0)
    def _():
        acc_ref[...] = jnp.zeros_like(acc_ref)

    acc_ref[...] += jnp.abs(y_ref[...] - t_ref[...])

    @pl.when(i == pl.num_programs(0) - 1)
    def _():
        o_ref[...] = jnp.sum(acc_ref[...]).reshape(1, 1)


def _make_adv_kernel(n_valid: int, block_rows: int, lanes: int,
                     needs_mask: bool):
    """sum(log(sigmoid(P) + 1e-9)) over a lane-dense flat slab.

    If `needs_mask` (padded fallback layout only), the validity mask is built
    only on the last grid step; all earlier blocks are fully valid.
    """
    def kernel(p_ref, o_ref, acc_ref):
        i = pl.program_id(0)
        last = pl.num_programs(0) - 1

        @pl.when(i == 0)
        def _():
            acc_ref[...] = jnp.zeros_like(acc_ref)

        x = p_ref[...]
        # Matches torch.sigmoid behavior: exp(-x) -> inf for very negative x
        # gives sig = 0, so log(sig + 1e-9) floors at log(1e-9) like torch.
        sig = 1.0 / (1.0 + jnp.exp(-x))
        term = jnp.log(sig + 1e-9)

        if needs_mask:
            @pl.when(i < last)
            def _():
                acc_ref[...] += term

            @pl.when(i == last)
            def _():
                row = jax.lax.broadcasted_iota(jnp.int32, (block_rows, lanes), 0)
                col = jax.lax.broadcasted_iota(jnp.int32, (block_rows, lanes), 1)
                flat_idx = (row + i * block_rows) * lanes + col
                acc_ref[...] += jnp.where(flat_idx < n_valid, term, 0.0)
        else:
            acc_ref[...] += term

        @pl.when(i == last)
        def _():
            o_ref[...] = jnp.sum(acc_ref[...]).reshape(1, 1)

    return kernel


# ----------------------------------------------------------------------------
# Layout helpers (no-copy flat layout with padded fallback)
# ----------------------------------------------------------------------------
def _flat_layout(total: int):
    """Returns (rows_total, block_rows, lanes, needs_pad).

    Preferred path: total % lanes == 0 for some lanes in {512,256,128} and the
    row count tiles exactly (block == full rows, or a multiple-of-8 divisor)
    -> the input is only reshaped (free), never copied/padded in HBM.
    """
    for lanes in (512, 256, 128):
        if total % lanes == 0:
            rows = total // lanes
            if rows <= _MAX_BLOCK_ROWS:
                return rows, rows, lanes, False
            d = _MAX_BLOCK_ROWS          # multiple of 8; step keeps it so
            while d >= 8:
                if rows % d == 0:
                    return rows, d, lanes, False
                d -= 8
    # Rare fallback: pad (full copy) — correctness over speed for odd shapes.
    lanes = _LANES
    rows = max(1, -(-total // lanes))
    br = min(_MAX_BLOCK_ROWS, _round_up(rows, 8))
    rows_p = _round_up(rows, br)
    return rows_p, br, lanes, True


def _to_flat2d(x, rows_total: int, lanes: int, needs_pad: bool):
    flat = x.reshape(-1).astype(jnp.float32)
    if needs_pad:
        pad = rows_total * lanes - flat.shape[0]
        if pad:
            flat = jnp.pad(flat, (0, pad))
    return flat.reshape(rows_total, lanes)


def _choose_planes_per_block(NC: int, Hi: int, plane_bytes: int):
    """Pick B dividing NC (no plane padding) with (B*Hi)%8==0 or B==NC."""
    cap = max(1, min(_MAX_PLANES_PER_BLOCK,
                     _PYR_BLOCK_BYTES // max(plane_bytes, 1)))
    for B in range(min(NC, cap), 0, -1):
        if NC % B == 0 and (B == NC or (B * Hi) % 8 == 0):
            return B, NC
    # Rare fallback: pad the plane count (copies Y/T for this level).
    align = 8 // math.gcd(Hi, 8)
    B = _round_up(min(cap, NC), align)
    return B, _round_up(NC, B)


# ----------------------------------------------------------------------------
# Wrappers around pallas_call
# ----------------------------------------------------------------------------
def pyr_level_l1_sum(y, t):
    """sum(|y - bilinear_resize(t, y.spatial)|) with align_corners=True."""
    N, C, Ho, Wo = y.shape
    _, _, Hi, Wi = t.shape
    NC = N * C

    plane_bytes = (Ho * Wo + Hi * Wi) * 4
    B, NC_p = _choose_planes_per_block(NC, Hi, plane_bytes)

    y2 = y.reshape(NC, Ho, Wo).astype(jnp.float32)
    t2 = t.reshape(NC * Hi, Wi).astype(jnp.float32)
    if NC_p != NC:  # rare fallback path only
        y2 = jnp.pad(y2, ((0, NC_p - NC), (0, 0), (0, 0)))
        t2 = jnp.pad(t2, ((0, (NC_p - NC) * Hi), (0, 0)))

    wh = jnp.asarray(_bilinear_weights(Ho, Hi))      # (Ho, Hi)
    wwt = jnp.asarray(_bilinear_weights_t(Wo, Wi))   # (Wi, Wo), pre-transposed

    grid = NC_p // B
    block_in_bytes = (B * Ho * Wo + B * Hi * Wi + Ho * Hi + Wi * Wo) * 4
    internal_bytes = B * Hi * Wo * 2 + Ho * Wo * 4   # a_all (bf16) + acc
    vmem = _vmem_limit(2 * block_in_bytes + internal_bytes)

    out = pl.pallas_call(
        _pyr_level_kernel,
        out_shape=jax.ShapeDtypeStruct((1, 1), jnp.float32),
        grid_spec=pltpu.PrefetchScalarGridSpec(
            num_scalar_prefetch=0,
            grid=(grid,),
            in_specs=[
                pl.BlockSpec((B, Ho, Wo), lambda i: (i, 0, 0)),
                pl.BlockSpec((B * Hi, Wi), lambda i: (i, 0)),
                pl.BlockSpec((Ho, Hi), lambda i: (0, 0)),
                pl.BlockSpec((Wi, Wo), lambda i: (0, 0)),
            ],
            out_specs=pl.BlockSpec((1, 1), lambda i: (0, 0)),
            scratch_shapes=[pltpu.VMEM((Ho, Wo), jnp.float32)],
        ),
        compiler_params=pltpu.CompilerParams(
            dimension_semantics=("arbitrary",),
            vmem_limit_bytes=vmem),
    )(y2, t2, wh, wwt)
    return out[0, 0]


def l1_sum(y, t):
    total = int(np.prod(y.shape))
    rows_t, br, lanes, needs_pad = _flat_layout(total)
    y2 = _to_flat2d(y, rows_t, lanes, needs_pad)
    t2 = _to_flat2d(t, rows_t, lanes, needs_pad)
    grid = rows_t // br
    blk = br * lanes * 4
    vmem = _vmem_limit(2 * 2 * blk + blk)            # 2 inputs dbl-buf + acc
    out = pl.pallas_call(
        _l1_sum_kernel,
        out_shape=jax.ShapeDtypeStruct((1, 1), jnp.float32),
        grid_spec=pltpu.PrefetchScalarGridSpec(
            num_scalar_prefetch=0,
            grid=(grid,),
            in_specs=[
                pl.BlockSpec((br, lanes), lambda i: (i, 0)),
                pl.BlockSpec((br, lanes), lambda i: (i, 0)),
            ],
            out_specs=pl.BlockSpec((1, 1), lambda i: (0, 0)),
            scratch_shapes=[pltpu.VMEM((br, lanes), jnp.float32)],
        ),
        compiler_params=pltpu.CompilerParams(
            dimension_semantics=("arbitrary",),
            vmem_limit_bytes=vmem),
    )(y2, t2)
    return out[0, 0]


def adv_log_sigmoid_mean(p_y):
    total = int(np.prod(p_y.shape))
    rows_t, br, lanes, needs_pad = _flat_layout(total)
    p2 = _to_flat2d(p_y, rows_t, lanes, needs_pad)
    grid = rows_t // br
    blk = br * lanes * 4
    vmem = _vmem_limit(2 * blk + blk)                # 1 input dbl-buf + acc
    kernel = _make_adv_kernel(total, br, lanes, needs_pad)
    out = pl.pallas_call(
        kernel,
        out_shape=jax.ShapeDtypeStruct((1, 1), jnp.float32),
        grid_spec=pltpu.PrefetchScalarGridSpec(
            num_scalar_prefetch=0,
            grid=(grid,),
            in_specs=[pl.BlockSpec((br, lanes), lambda i: (i, 0))],
            out_specs=pl.BlockSpec((1, 1), lambda i: (0, 0)),
            scratch_shapes=[pltpu.VMEM((br, lanes), jnp.float32)],
        ),
        compiler_params=pltpu.CompilerParams(
            dimension_semantics=("arbitrary",),
            vmem_limit_bytes=vmem),
    )(p2)
    return out[0, 0] / total


# ----------------------------------------------------------------------------
# My_loss equivalent
# ----------------------------------------------------------------------------
class MyLossPallas:
    def __init__(self, size=256, Pyr_weight=1.0, Rec_weight=1.0, Adv_weight=1.0):
        self.size = float(size)
        self.pyr_weight = float(Pyr_weight)
        self.rec_weight = float(Rec_weight)
        self.adv_weight = float(Adv_weight)
        self._with_adv = jax.jit(self._forward_with_adv)
        self._without_adv = jax.jit(self._forward_without_adv)

    def _pyr_rec(self, Y_list, T_list):
        n = len(Y_list)
        pyrloss = jnp.float32(0.0)
        for m in range(n - 1):
            s = pyr_level_l1_sum(Y_list[m], T_list[m])
            pyrloss = pyrloss + (self.pyr_weight * (2.0 ** (n - m - 2))
                                 * s / Y_list[m].shape[0])
        recloss = (self.rec_weight * l1_sum(Y_list[-1], T_list[-1])
                   / Y_list[-1].shape[0])
        return recloss, pyrloss

    def _forward_without_adv(self, Y_list, T_list):
        recloss, pyrloss = self._pyr_rec(Y_list, T_list)
        return recloss, pyrloss, pyrloss + recloss

    def _forward_with_adv(self, Y_list, T_list, P_Y):
        recloss, pyrloss = self._pyr_rec(Y_list, T_list)
        advloss = (-self.adv_weight * 12.0 * self.size * self.size
                   * adv_log_sigmoid_mean(P_Y))
        return recloss, pyrloss, advloss, pyrloss + recloss + advloss

    def __call__(self, Y_list, T_list, P_Y=None, withoutadvloss=False):
        if withoutadvloss:
            return self._without_adv(tuple(Y_list), tuple(T_list))
        return self._with_adv(tuple(Y_list), tuple(T_list), P_Y)


# ----------------------------------------------------------------------------
# Demo
# ----------------------------------------------------------------------------
if __name__ == "__main__":
    key = jax.random.PRNGKey(0)
    kY0, kY1, kY2, kT0, kT1, kT2, kP = jax.random.split(key, 7)

    N, C = 2, 3
    # 3-level pyramid of predictions (coarse -> fine), targets at full res.
    Y_list = [
        jax.random.normal(kY0, (N, C, 4, 4), dtype=jnp.float32),
        jax.random.normal(kY1, (N, C, 8, 8), dtype=jnp.float32),
        jax.random.normal(kY2, (N, C, 16, 16), dtype=jnp.float32),
    ]
    T_list = [
        jax.random.normal(kT0, (N, C, 16, 16), dtype=jnp.float32),
        jax.random.normal(kT1, (N, C, 16, 16), dtype=jnp.float32),
        jax.random.normal(kT2, (N, C, 16, 16), dtype=jnp.float32),
    ]
    P_Y = jax.random.normal(kP, (N, 1, 16, 16), dtype=jnp.float32)

    loss_fn = MyLossPallas(size=16, Pyr_weight=1.0, Rec_weight=1.0, Adv_weight=1.0)
    recloss, pyrloss, advloss, myloss = loss_fn(Y_list, T_list, P_Y)
    jax.block_until_ready((recloss, pyrloss, advloss, myloss))
    print("KERNEL_OK")
</pallas_src>

<mosaic_0001>
module attributes {stable_mosaic.version = 11 : i64} {
  func.func @_l1_sum_kernel(%arg0: i32, %arg1: memref<3x512xf32, #tpu.memory_space<vmem>>, %arg2: memref<3x512xf32, #tpu.memory_space<vmem>>, %arg3: memref<1x1xf32, #tpu.memory_space<vmem>>, %arg4: memref<3x512xf32, #tpu.memory_space<vmem>>) attributes {dimension_semantics = [#tpu.dimension_semantics<arbitrary>], iteration_bounds = array<i64: 1>, scalar_prefetch = 0 : i64, scratch_operands = 1 : i64, tpu.core_type = #tpu.core_type<tc>, window_params = [{transform_indices = @transform_0, window_bounds = array<i64: 3, 512>}, {transform_indices = @transform_1, window_bounds = array<i64: 3, 512>}, {pipeline_mode = #tpu.pipeline_mode<synchronous>, transform_indices = @transform_2, window_bounds = array<i64: 1, 1>}]} {
    %c0_i32 = arith.constant 0 : i32
    %0 = arith.cmpi eq, %arg0, %c0_i32 : i32
    %1 = arith.extui %0 : i1 to i32
    %c0_i32_0 = arith.constant 0 : i32
    %2 = arith.cmpi ne, %1, %c0_i32_0 : i32
    scf.if %2 {
      %cst = arith.constant 0.000000e+00 : f32
      %13 = vector.broadcast %cst : f32 to vector<3x512xf32>
      %c0_10 = arith.constant 0 : index
      %c0_11 = arith.constant 0 : index
      %14 = vector.load %arg4[%c0_10, %c0_11] : memref<3x512xf32, #tpu.memory_space<vmem>>, vector<3x512xf32>
      tpu.vector_store %arg4[%c0_10, %c0_11], %13 {strides = array<i32>} : memref<3x512xf32, #tpu.memory_space<vmem>>, vector<3x512xf32>,
    } else {
    }
    %c0 = arith.constant 0 : index
    %c0_1 = arith.constant 0 : index
    %3 = vector.load %arg4[%c0, %c0_1] : memref<3x512xf32, #tpu.memory_space<vmem>>, vector<3x512xf32>
    %c0_2 = arith.constant 0 : index
    %c0_3 = arith.constant 0 : index
    %4 = vector.load %arg1[%c0_2, %c0_3] : memref<3x512xf32, #tpu.memory_space<vmem>>, vector<3x512xf32>
    %c0_4 = arith.constant 0 : index
    %c0_5 = arith.constant 0 : index
    %5 = vector.load %arg2[%c0_4, %c0_5] : memref<3x512xf32, #tpu.memory_space<vmem>>, vector<3x512xf32>
    %6 = arith.subf %4, %5 : vector<3x512xf32>
    %7 = math.absf %6 : vector<3x512xf32>
    %8 = arith.addf %3, %7 : vector<3x512xf32>
    %c0_6 = arith.constant 0 : index
    %c0_7 = arith.constant 0 : index
    %9 = vector.load %arg4[%c0_6, %c0_7] : memref<3x512xf32, #tpu.memory_space<vmem>>, vector<3x512xf32>
    tpu.vector_store %arg4[%c0_6, %c0_7], %8 {strides = array<i32>} : memref<3x512xf32, #tpu.memory_space<vmem>>, vector<3x512xf32>,
    %c0_i32_8 = arith.constant 0 : i32
    %10 = arith.cmpi eq, %arg0, %c0_i32_8 : i32
    %11 = arith.extui %10 : i1 to i32
    %c0_i32_9 = arith.constant 0 : i32
    %12 = arith.cmpi ne, %11, %c0_i32_9 : i32
    scf.if %12 {
      %c0_10 = arith.constant 0 : index
      %c0_11 = arith.constant 0 : index
      %13 = vector.load %arg4[%c0_10, %c0_11] : memref<3x512xf32, #tpu.memory_space<vmem>>, vector<3x512xf32>
      %14 = vector.shape_cast %13 : vector<3x512xf32> to vector<1x3x512xf32>
      %cst = arith.constant dense<0.000000e+00> : vector<1xf32>
      %15 = vector.multi_reduction <add>, %14, %cst [1, 2] : vector<1x3x512xf32> to vector<1xf32>
      %16 = vector.shape_cast %15 : vector<1xf32> to vector<1x1x1xf32>
      %17 = vector.extract %16[0, 0, 0] : f32 from vector<1x1x1xf32>
      %18 = vector.broadcast %17 : f32 to vector<1x1xf32>
      %c0_12 = arith.constant 0 : index
      %c0_13 = arith.constant 0 : index
      %19 = vector.load %arg3[%c0_12, %c0_13] : memref<1x1xf32, #tpu.memory_space<vmem>>, vector<1x1xf32>
      tpu.vector_store %arg3[%c0_12, %c0_13], %18 {strides = array<i32>} : memref<1x1xf32, #tpu.memory_space<vmem>>, vector<1x1xf32>,
    } else {
    }
    return
  }
  func.func @transform_0(%arg0: i32) -> (i32, i32) {
    %c0_i32 = arith.constant 0 : i32
    %c0_i32_0 = arith.constant 0 : i32
    return %arg0, %c0_i32 : i32, i32
  }
  func.func @transform_1(%arg0: i32) -> (i32, i32) {
    %c0_i32 = arith.constant 0 : i32
    %c0_i32_0 = arith.constant 0 : i32
    return %arg0, %c0_i32 : i32, i32
  }
  func.func @transform_2(%arg0: i32) -> (i32, i32) {
    %c0_i32 = arith.constant 0 : i32
    %c0_i32_0 = arith.constant 0 : i32
    %c0_i32_1 = arith.constant 0 : i32
    return %c0_i32, %c0_i32_0 : i32, i32
  }
}

module attributes {stable_mosaic.version = 11 : i64} {
  func.func @_pyr_level_kernel(%arg0: i32, %arg1: memref<6x8x8xf32, #tpu.memory_space<vmem>>, %arg2: memref<96x16xf32, #tpu.memory_space<vmem>>, %arg3: memref<8x16xf32, #tpu.memory_space<vmem>>, %arg4: memref<16x8xf32, #tpu.memory_space<vmem>>, %arg5: memref<1x1xf32, #tpu.memory_space<vmem>>, %arg6: memref<8x8xf32, #tpu.memory_space<vmem>>) attributes {dimension_semantics = [#tpu.dimension_semantics<arbitrary>], iteration_bounds = array<i64: 1>, scalar_prefetch = 0 : i64, scratch_operands = 1 : i64, tpu.core_type = #tpu.core_type<tc>, window_params = [{transform_indices = @transform_0, window_bounds = array<i64: 6, 8, 8>}, {transform_indices = @transform_1, window_bounds = array<i64: 96, 16>}, {pipeline_mode = #tpu.pipeline_mode<synchronous>, transform_indices = @transform_2, window_bounds = array<i64: 8, 16>}, {pipeline_mode = #tpu.pipeline_mode<synchronous>, transform_indices = @transform_3, window_bounds = array<i64: 16, 8>}, {pipeline_mode = #tpu.pipeline_mode<synchronous>, transform_indices = @transform_4, window_bounds = array<i64: 1, 1>}]} {
    %c0_i32 = arith.constant 0 : i32
    %0 = arith.cmpi eq, %arg0, %c0_i32 : i32
    %1 = arith.extui %0 : i1 to i32
    %c0_i32_0 = arith.constant 0 : i32
    %2 = arith.cmpi ne, %1, %c0_i32_0 : i32
    scf.if %2 {
      %cst_32 = arith.constant 0.000000e+00 : f32
      %60 = vector.broadcast %cst_32 : f32 to vector<8x8xf32>
      %c0_33 = arith.constant 0 : index
      %c0_34 = arith.constant 0 : index
      %61 = vector.load %arg6[%c0_33, %c0_34] : memref<8x8xf32, #tpu.memory_space<vmem>>, vector<8x8xf32>
      tpu.vector_store %arg6[%c0_33, %c0_34], %60 {strides = array<i32>} : memref<8x8xf32, #tpu.memory_space<vmem>>, vector<8x8xf32>,
    } else {
    }
    %c0 = arith.constant 0 : index
    %c0_1 = arith.constant 0 : index
    %3 = vector.load %arg3[%c0, %c0_1] : memref<8x16xf32, #tpu.memory_space<vmem>>, vector<8x16xf32>
    %4 = arith.truncf %3 : vector<8x16xf32> to vector<8x16xbf16>
    %c0_2 = arith.constant 0 : index
    %c0_3 = arith.constant 0 : index
    %5 = vector.load %arg4[%c0_2, %c0_3] : memref<16x8xf32, #tpu.memory_space<vmem>>, vector<16x8xf32>
    %6 = arith.truncf %5 : vector<16x8xf32> to vector<16x8xbf16>
    %c0_4 = arith.constant 0 : index
    %c0_5 = arith.constant 0 : index
    %7 = vector.load %arg2[%c0_4, %c0_5] : memref<96x16xf32, #tpu.memory_space<vmem>>, vector<96x16xf32>
    %8 = arith.truncf %7 : vector<96x16xf32> to vector<96x16xbf16>
    %cst = arith.constant dense<0.000000e+00> : vector<96x8xf32>
    %9 = tpu.matmul %8, %6, %cst {dimension_numbers = #tpu.dot_dimension_numbers<[1], [0], [0], [1], [0, 0, 1, 1], [], []>} : vector<96x16xbf16>, vector<16x8xbf16>, vector<96x8xf32> -> vector<96x8xf32>
    %10 = arith.truncf %9 : vector<96x8xf32> to vector<96x8xbf16>
    %cst_6 = arith.constant 0.000000e+00 : f32
    %11 = vector.broadcast %cst_6 : f32 to vector<8x8xf32>
    %12 = vector.extract_strided_slice %10 {offsets = [0, 0], sizes = [16, 8], strides = [1, 1]} : vector<96x8xbf16> to vector<16x8xbf16>
    %cst_7 = arith.constant dense<0.000000e+00> : vector<8x8xf32>
    %13 = tpu.matmul %4, %12, %cst_7 {dimension_numbers = #tpu.dot_dimension_numbers<[1], [0], [0], [1], [0, 0, 1, 1], [], []>} : vector<8x16xbf16>, vector<16x8xbf16>, vector<8x8xf32> -> vector<8x8xf32>
    %c0_8 = arith.constant 0 : index
    %c0_9 = arith.constant 0 : index
    %c0_10 = arith.constant 0 : index
    %14 = vector.load %arg1[%c0_8, %c0_9, %c0_10] : memref<6x8x8xf32, #tpu.memory_space<vmem>>, vector<1x8x8xf32>
    %15 = vector.shape_cast %14 : vector<1x8x8xf32> to vector<8x8xf32>
    %16 = arith.subf %15, %13 : vector<8x8xf32>
    %17 = math.absf %16 : vector<8x8xf32>
    %18 = arith.addf %11, %17 : vector<8x8xf32>
    %19 = vector.extract_strided_slice %10 {offsets = [16, 0], sizes = [16, 8], strides = [1, 1]} : vector<96x8xbf16> to vector<16x8xbf16>
    %cst_11 = arith.constant dense<0.000000e+00> : vector<8x8xf32>
    %20 = tpu.matmul %4, %19, %cst_11 {dimension_numbers = #tpu.dot_dimension_numbers<[1], [0], [0], [1], [0, 0, 1, 1], [], []>} : vector<8x16xbf16>, vector<16x8xbf16>, vector<8x8xf32> -> vector<8x8xf32>
    %c1 = arith.constant 1 : index
    %c0_12 = arith.constant 0 : index
    %c0_13 = arith.constant 0 : index
    %21 = vector.load %arg1[%c1, %c0_12, %c0_13] : memref<6x8x8xf32, #tpu.memory_space<vmem>>, vector<1x8x8xf32>
    %22 = vector.shape_cast %21 : vector<1x8x8xf32> to vector<8x8xf32>
    %23 = arith.subf %22, %20 : vector<8x8xf32>
    %24 = math.absf %23 : vector<8x8xf32>
    %25 = arith.addf %18, %24 : vector<8x8xf32>
    %26 = vector.extract_strided_slice %10 {offsets = [32, 0], sizes = [16, 8], strides = [1, 1]} : vector<96x8xbf16> to vector<16x8xbf16>
    %cst_14 = arith.constant dense<0.000000e+00> : vector<8x8xf32>
    %27 = tpu.matmul %4, %26, %cst_14 {dimension_numbers = #tpu.dot_dimension_numbers<[1], [0], [0], [1], [0, 0, 1, 1], [], []>} : vector<8x16xbf16>, vector<16x8xbf16>, vector<8x8xf32> -> vector<8x8xf32>
    %c2 = arith.constant 2 : index
    %c0_15 = arith.constant 0 : index
    %c0_16 = arith.constant 0 : index
    %28 = vector.load %arg1[%c2, %c0_15, %c0_16] : memref<6x8x8xf32, #tpu.memory_space<vmem>>, vector<1x8x8xf32>
    %29 = vector.shape_cast %28 : vector<1x8x8xf32> to vector<8x8xf32>
    %30 = arith.subf %29, %27 : vector<8x8xf32>
    %31 = math.absf %30 : vector<8x8xf32>
    %32 = arith.addf %25, %31 : vector<8x8xf32>
    %33 = vector.extract_strided_slice %10 {offsets = [48, 0], sizes = [16, 8], strides = [1, 1]} : vector<96x8xbf16> to vector<16x8xbf16>
    %cst_17 = arith.constant dense<0.000000e+00> : vector<8x8xf32>
    %34 = tpu.matmul %4, %33, %cst_17 {dimension_numbers = #tpu.dot_dimension_numbers<[1], [0], [0], [1], [0, 0, 1, 1], [], []>} : vector<8x16xbf16>, vector<16x8xbf16>, vector<8x8xf32> -> vector<8x8xf32>
    %c3 = arith.constant 3 : index
    %c0_18 = arith.constant 0 : index
    %c0_19 = arith.constant 0 : index
    %35 = vector.load %arg1[%c3, %c0_18, %c0_19] : memref<6x8x8xf32, #tpu.memory_space<vmem>>, vector<1x8x8xf32>
    %36 = vector.shape_cast %35 : vector<1x8x8xf32> to vector<8x8xf32>
    %37 = arith.subf %36, %34 : vector<8x8xf32>
    %38 = math.absf %37 : vector<8x8xf32>
    %39 = arith.addf %32, %38 : vector<8x8xf32>
    %40 = vector.extract_strided_slice %10 {offsets = [64, 0], sizes = [16, 8], strides = [1, 1]} : vector<96x8xbf16> to vector<16x8xbf16>
    %cst_20 = arith.constant dense<0.000000e+00> : vector<8x8xf32>
    %41 = tpu.matmul %4, %40, %cst_20 {dimension_numbers = #tpu.dot_dimension_numbers<[1], [0], [0], [1], [0, 0, 1, 1], [], []>} : vector<8x16xbf16>, vector<16x8xbf16>, vector<8x8xf32> -> vector<8x8xf32>
    %c4 = arith.constant 4 : index
    %c0_21 = arith.constant 0 : index
    %c0_22 = arith.constant 0 : index
    %42 = vector.load %arg1[%c4, %c0_21, %c0_22] : memref<6x8x8xf32, #tpu.memory_space<vmem>>, vector<1x8x8xf32>
    %43 = vector.shape_cast %42 : vector<1x8x8xf32> to vector<8x8xf32>
    %44 = arith.subf %43, %41 : vector<8x8xf32>
    %45 = math.absf %44 : vector<8x8xf32>
    %46 = arith.addf %39, %45 : vector<8x8xf32>
    %47 = vector.extract_strided_slice %10 {offsets = [80, 0], sizes = [16, 8], strides = [1, 1]} : vector<96x8xbf16> to vector<16x8xbf16>
    %cst_23 = arith.constant dense<0.000000e+00> : vector<8x8xf32>
    %48 = tpu.matmul %4, %47, %cst_23 {dimension_numbers = #tpu.dot_dimension_numbers<[1], [0], [0], [1], [0, 0, 1, 1], [], []>} : vector<8x16xbf16>, vector<16x8xbf16>, vector<8x8xf32> -> vector<8x8xf32>
    %c5 = arith.constant 5 : index
    %c0_24 = arith.constant 0 : index
    %c0_25 = arith.constant 0 : index
    %49 = vector.load %arg1[%c5, %c0_24, %c0_25] : memref<6x8x8xf32, #tpu.memory_space<vmem>>, vector<1x8x8xf32>
    %50 = vector.shape_cast %49 : vector<1x8x8xf32> to vector<8x8xf32>
    %51 = arith.subf %50, %48 : vector<8x8xf32>
    %52 = math.absf %51 : vector<8x8xf32>
    %53 = arith.addf %46, %52 : vector<8x8xf32>
    %c0_26 = arith.constant 0 : index
    %c0_27 = arith.constant 0 : index
    %54 = vector.load %arg6[%c0_26, %c0_27] : memref<8x8xf32, #tpu.memory_space<vmem>>, vector<8x8xf32>
    %55 = arith.addf %54, %53 : vector<8x8xf32>
    %c0_28 = arith.constant 0 : index
    %c0_29 = arith.constant 0 : index
    %56 = vector.load %arg6[%c0_28, %c0_29] : memref<8x8xf32, #tpu.memory_space<vmem>>, vector<8x8xf32>
    tpu.vector_store %arg6[%c0_28, %c0_29], %55 {strides = array<i32>} : memref<8x8xf32, #tpu.memory_space<vmem>>, vector<8x8xf32>,
    %c0_i32_30 = arith.constant 0 : i32
    %57 = arith.cmpi eq, %arg0, %c0_i32_30 : i32
    %58 = arith.extui %57 : i1 to i32
    %c0_i32_31 = arith.constant 0 : i32
    %59 = arith.cmpi ne, %58, %c0_i32_31 : i32
    scf.if %59 {
      %c0_32 = arith.constant 0 : index
      %c0_33 = arith.constant 0 : index
      %60 = vector.load %arg6[%c0_32, %c0_33] : memref<8x8xf32, #tpu.memory_space<vmem>>, vector<8x8xf32>
      %61 = vector.shape_cast %60 : vector<8x8xf32> to vector<1x8x8xf32>
      %cst_34 = arith.constant dense<0.000000e+00> : vector<1xf32>
      %62 = vector.multi_reduction <add>, %61, %cst_34 [1, 2] : vector<1x8x8xf32> to vector<1xf32>
      %63 = vector.shape_cast %62 : vector<1xf32> to vector<1x1x1xf32>
      %64 = vector.extract %63[0, 0, 0] : f32 from vector<1x1x1xf32>
      %65 = vector.broadcast %64 : f32 to vector<1x1xf32>
      %c0_35 = arith.constant 0 : index
      %c0_36 = arith.constant 0 : index
      %66 = vector.load %arg5[%c0_35, %c0_36] : memref<1x1xf32, #tpu.memory_space<vmem>>, vector<1x1xf32>
      tpu.vector_store %arg5[%c0_35, %c0_36], %65 {strides = array<i32>} : memref<1x1xf32, #tpu.memory_space<vmem>>, vector<1x1xf32>,
    } else {
    }
    return
  }
  func.func @transform_0(%arg0: i32) -> (i32, i32, i32) {
    %c0_i32 = arith.constant 0 : i32
    %c0_i32_0 = arith.constant 0 : i32
    %c0_i32_1 = arith.constant 0 : i32
    return %arg0, %c0_i32, %c0_i32_0 : i32, i32, i32
  }
  func.func @transform_1(%arg0: i32) -> (i32, i32) {
    %c0_i32 = arith.constant 0 : i32
    %c0_i32_0 = arith.constant 0 : i32
    return %arg0, %c0_i32 : i32, i32
  }
  func.func @transform_2(%arg0: i32) -> (i32, i32) {
    %c0_i32 = arith.constant 0 : i32
    %c0_i32_0 = arith.constant 0 : i32
    %c0_i32_1 = arith.constant 0 : i32
    return %c0_i32, %c0_i32_0 : i32, i32
  }
  func.func @transform_3(%arg0: i32) -> (i32, i32) {
    %c0_i32 = arith.constant 0 : i32
    %c0_i32_0 = arith.constant 0 : i32
    %c0_i32_1 = arith.constant 0 : i32
    return %c0_i32, %c0_i32_0 : i32, i32
  }
  func.func @transform_4(%arg0: i32) -> (i32, i32) {
    %c0_i32 = arith.constant 0 : i32
    %c0_i32_0 = arith.constant 0 : i32
    %c0_i32_1 = arith.constant 0 : i32
    return %c0_i32, %c0_i32_0 : i32, i32
  }
}

module attributes {stable_mosaic.version = 11 : i64} {
  func.func @_pyr_level_kernel(%arg0: i32, %arg1: memref<6x4x4xf32, #tpu.memory_space<vmem>>, %arg2: memref<96x16xf32, #tpu.memory_space<vmem>>, %arg3: memref<4x16xf32, #tpu.memory_space<vmem>>, %arg4: memref<16x4xf32, #tpu.memory_space<vmem>>, %arg5: memref<1x1xf32, #tpu.memory_space<vmem>>, %arg6: memref<4x4xf32, #tpu.memory_space<vmem>>) attributes {dimension_semantics = [#tpu.dimension_semantics<arbitrary>], iteration_bounds = array<i64: 1>, scalar_prefetch = 0 : i64, scratch_operands = 1 : i64, tpu.core_type = #tpu.core_type<tc>, window_params = [{transform_indices = @transform_0, window_bounds = array<i64: 6, 4, 4>}, {transform_indices = @transform_1, window_bounds = array<i64: 96, 16>}, {pipeline_mode = #tpu.pipeline_mode<synchronous>, transform_indices = @transform_2, window_bounds = array<i64: 4, 16>}, {pipeline_mode = #tpu.pipeline_mode<synchronous>, transform_indices = @transform_3, window_bounds = array<i64: 16, 4>}, {pipeline_mode = #tpu.pipeline_mode<synchronous>, transform_indices = @transform_4, window_bounds = array<i64: 1, 1>}]} {
    %c0_i32 = arith.constant 0 : i32
    %0 = arith.cmpi eq, %arg0, %c0_i32 : i32
    %1 = arith.extui %0 : i1 to i32
    %c0_i32_0 = arith.constant 0 : i32
    %2 = arith.cmpi ne, %1, %c0_i32_0 : i32
    scf.if %2 {
      %cst_32 = arith.constant 0.000000e+00 : f32
      %60 = vector.broadcast %cst_32 : f32 to vector<4x4xf32>
      %c0_33 = arith.constant 0 : index
      %c0_34 = arith.constant 0 : index
      %61 = vector.load %arg6[%c0_33, %c0_34] : memref<4x4xf32, #tpu.memory_space<vmem>>, vector<4x4xf32>
      tpu.vector_store %arg6[%c0_33, %c0_34], %60 {strides = array<i32>} : memref<4x4xf32, #tpu.memory_space<vmem>>, vector<4x4xf32>,
    } else {
    }
    %c0 = arith.constant 0 : index
    %c0_1 = arith.constant 0 : index
    %3 = vector.load %arg3[%c0, %c0_1] : memref<4x16xf32, #tpu.memory_space<vmem>>, vector<4x16xf32>
    %4 = arith.truncf %3 : vector<4x16xf32> to vector<4x16xbf16>
    %c0_2 = arith.constant 0 : index
    %c0_3 = arith.constant 0 : index
    %5 = vector.load %arg4[%c0_2, %c0_3] : memref<16x4xf32, #tpu.memory_space<vmem>>, vector<16x4xf32>
    %6 = arith.truncf %5 : vector<16x4xf32> to vector<16x4xbf16>
    %c0_4 = arith.constant 0 : index
    %c0_5 = arith.constant 0 : index
    %7 = vector.load %arg2[%c0_4, %c0_5] : memref<96x16xf32, #tpu.memory_space<vmem>>, vector<96x16xf32>
    %8 = arith.truncf %7 : vector<96x16xf32> to vector<96x16xbf16>
    %cst = arith.constant dense<0.000000e+00> : vector<96x4xf32>
    %9 = tpu.matmul %8, %6, %cst {dimension_numbers = #tpu.dot_dimension_numbers<[1], [0], [0], [1], [0, 0, 1, 1], [], []>} : vector<96x16xbf16>, vector<16x4xbf16>, vector<96x4xf32> -> vector<96x4xf32>
    %10 = arith.truncf %9 : vector<96x4xf32> to vector<96x4xbf16>
    %cst_6 = arith.constant 0.000000e+00 : f32
    %11 = vector.broadcast %cst_6 : f32 to vector<4x4xf32>
    %12 = vector.extract_strided_slice %10 {offsets = [0, 0], sizes = [16, 4], strides = [1, 1]} : vector<96x4xbf16> to vector<16x4xbf16>
    %cst_7 = arith.constant dense<0.000000e+00> : vector<4x4xf32>
    %13 = tpu.matmul %4, %12, %cst_7 {dimension_numbers = #tpu.dot_dimension_numbers<[1], [0], [0], [1], [0, 0, 1, 1], [], []>} : vector<4x16xbf16>, vector<16x4xbf16>, vector<4x4xf32> -> vector<4x4xf32>
    %c0_8 = arith.constant 0 : index
    %c0_9 = arith.constant 0 : index
    %c0_10 = arith.constant 0 : index
    %14 = vector.load %arg1[%c0_8, %c0_9, %c0_10] : memref<6x4x4xf32, #tpu.memory_space<vmem>>, vector<1x4x4xf32>
    %15 = vector.shape_cast %14 : vector<1x4x4xf32> to vector<4x4xf32>
    %16 = arith.subf %15, %13 : vector<4x4xf32>
    %17 = math.absf %16 : vector<4x4xf32>
    %18 = arith.addf %11, %17 : vector<4x4xf32>
    %19 = vector.extract_strided_slice %10 {offsets = [16, 0], sizes = [16, 4], strides = [1, 1]} : vector<96x4xbf16> to vector<16x4xbf16>
    %cst_11 = arith.constant dense<0.000000e+00> : vector<4x4xf32>
    %20 = tpu.matmul %4, %19, %cst_11 {dimension_numbers = #tpu.dot_dimension_numbers<[1], [0], [0], [1], [0, 0, 1, 1], [], []>} : vector<4x16xbf16>, vector<16x4xbf16>, vector<4x4xf32> -> vector<4x4xf32>
    %c1 = arith.constant 1 : index
    %c0_12 = arith.constant 0 : index
    %c0_13 = arith.constant 0 : index
    %21 = vector.load %arg1[%c1, %c0_12, %c0_13] : memref<6x4x4xf32, #tpu.memory_space<vmem>>, vector<1x4x4xf32>
    %22 = vector.shape_cast %21 : vector<1x4x4xf32> to vector<4x4xf32>
    %23 = arith.subf %22, %20 : vector<4x4xf32>
    %24 = math.absf %23 : vector<4x4xf32>
    %25 = arith.addf %18, %24 : vector<4x4xf32>
    %26 = vector.extract_strided_slice %10 {offsets = [32, 0], sizes = [16, 4], strides = [1, 1]} : vector<96x4xbf16> to vector<16x4xbf16>
    %cst_14 = arith.constant dense<0.000000e+00> : vector<4x4xf32>
    %27 = tpu.matmul %4, %26, %cst_14 {dimension_numbers = #tpu.dot_dimension_numbers<[1], [0], [0], [1], [0, 0, 1, 1], [], []>} : vector<4x16xbf16>, vector<16x4xbf16>, vector<4x4xf32> -> vector<4x4xf32>
    %c2 = arith.constant 2 : index
    %c0_15 = arith.constant 0 : index
    %c0_16 = arith.constant 0 : index
    %28 = vector.load %arg1[%c2, %c0_15, %c0_16] : memref<6x4x4xf32, #tpu.memory_space<vmem>>, vector<1x4x4xf32>
    %29 = vector.shape_cast %28 : vector<1x4x4xf32> to vector<4x4xf32>
    %30 = arith.subf %29, %27 : vector<4x4xf32>
    %31 = math.absf %30 : vector<4x4xf32>
    %32 = arith.addf %25, %31 : vector<4x4xf32>
    %33 = vector.extract_strided_slice %10 {offsets = [48, 0], sizes = [16, 4], strides = [1, 1]} : vector<96x4xbf16> to vector<16x4xbf16>
    %cst_17 = arith.constant dense<0.000000e+00> : vector<4x4xf32>
    %34 = tpu.matmul %4, %33, %cst_17 {dimension_numbers = #tpu.dot_dimension_numbers<[1], [0], [0], [1], [0, 0, 1, 1], [], []>} : vector<4x16xbf16>, vector<16x4xbf16>, vector<4x4xf32> -> vector<4x4xf32>
    %c3 = arith.constant 3 : index
    %c0_18 = arith.constant 0 : index
    %c0_19 = arith.constant 0 : index
    %35 = vector.load %arg1[%c3, %c0_18, %c0_19] : memref<6x4x4xf32, #tpu.memory_space<vmem>>, vector<1x4x4xf32>
    %36 = vector.shape_cast %35 : vector<1x4x4xf32> to vector<4x4xf32>
    %37 = arith.subf %36, %34 : vector<4x4xf32>
    %38 = math.absf %37 : vector<4x4xf32>
    %39 = arith.addf %32, %38 : vector<4x4xf32>
    %40 = vector.extract_strided_slice %10 {offsets = [64, 0], sizes = [16, 4], strides = [1, 1]} : vector<96x4xbf16> to vector<16x4xbf16>
    %cst_20 = arith.constant dense<0.000000e+00> : vector<4x4xf32>
    %41 = tpu.matmul %4, %40, %cst_20 {dimension_numbers = #tpu.dot_dimension_numbers<[1], [0], [0], [1], [0, 0, 1, 1], [], []>} : vector<4x16xbf16>, vector<16x4xbf16>, vector<4x4xf32> -> vector<4x4xf32>
    %c4 = arith.constant 4 : index
    %c0_21 = arith.constant 0 : index
    %c0_22 = arith.constant 0 : index
    %42 = vector.load %arg1[%c4, %c0_21, %c0_22] : memref<6x4x4xf32, #tpu.memory_space<vmem>>, vector<1x4x4xf32>
    %43 = vector.shape_cast %42 : vector<1x4x4xf32> to vector<4x4xf32>
    %44 = arith.subf %43, %41 : vector<4x4xf32>
    %45 = math.absf %44 : vector<4x4xf32>
    %46 = arith.addf %39, %45 : vector<4x4xf32>
    %47 = vector.extract_strided_slice %10 {offsets = [80, 0], sizes = [16, 4], strides = [1, 1]} : vector<96x4xbf16> to vector<16x4xbf16>
    %cst_23 = arith.constant dense<0.000000e+00> : vector<4x4xf32>
    %48 = tpu.matmul %4, %47, %cst_23 {dimension_numbers = #tpu.dot_dimension_numbers<[1], [0], [0], [1], [0, 0, 1, 1], [], []>} : vector<4x16xbf16>, vector<16x4xbf16>, vector<4x4xf32> -> vector<4x4xf32>
    %c5 = arith.constant 5 : index
    %c0_24 = arith.constant 0 : index
    %c0_25 = arith.constant 0 : index
    %49 = vector.load %arg1[%c5, %c0_24, %c0_25] : memref<6x4x4xf32, #tpu.memory_space<vmem>>, vector<1x4x4xf32>
    %50 = vector.shape_cast %49 : vector<1x4x4xf32> to vector<4x4xf32>
    %51 = arith.subf %50, %48 : vector<4x4xf32>
    %52 = math.absf %51 : vector<4x4xf32>
    %53 = arith.addf %46, %52 : vector<4x4xf32>
    %c0_26 = arith.constant 0 : index
    %c0_27 = arith.constant 0 : index
    %54 = vector.load %arg6[%c0_26, %c0_27] : memref<4x4xf32, #tpu.memory_space<vmem>>, vector<4x4xf32>
    %55 = arith.addf %54, %53 : vector<4x4xf32>
    %c0_28 = arith.constant 0 : index
    %c0_29 = arith.constant 0 : index
    %56 = vector.load %arg6[%c0_28, %c0_29] : memref<4x4xf32, #tpu.memory_space<vmem>>, vector<4x4xf32>
    tpu.vector_store %arg6[%c0_28, %c0_29], %55 {strides = array<i32>} : memref<4x4xf32, #tpu.memory_space<vmem>>, vector<4x4xf32>,
    %c0_i32_30 = arith.constant 0 : i32
    %57 = arith.cmpi eq, %arg0, %c0_i32_30 : i32
    %58 = arith.extui %57 : i1 to i32
    %c0_i32_31 = arith.constant 0 : i32
    %59 = arith.cmpi ne, %58, %c0_i32_31 : i32
    scf.if %59 {
      %c0_32 = arith.constant 0 : index
      %c0_33 = arith.constant 0 : index
      %60 = vector.load %arg6[%c0_32, %c0_33] : memref<4x4xf32, #tpu.memory_space<vmem>>, vector<4x4xf32>
      %61 = vector.shape_cast %60 : vector<4x4xf32> to vector<1x4x4xf32>
      %cst_34 = arith.constant dense<0.000000e+00> : vector<1xf32>
      %62 = vector.multi_reduction <add>, %61, %cst_34 [1, 2] : vector<1x4x4xf32> to vector<1xf32>
      %63 = vector.shape_cast %62 : vector<1xf32> to vector<1x1x1xf32>
      %64 = vector.extract %63[0, 0, 0] : f32 from vector<1x1x1xf32>
      %65 = vector.broadcast %64 : f32 to vector<1x1xf32>
      %c0_35 = arith.constant 0 : index
      %c0_36 = arith.constant 0 : index
      %66 = vector.load %arg5[%c0_35, %c0_36] : memref<1x1xf32, #tpu.memory_space<vmem>>, vector<1x1xf32>
      tpu.vector_store %arg5[%c0_35, %c0_36], %65 {strides = array<i32>} : memref<1x1xf32, #tpu.memory_space<vmem>>, vector<1x1xf32>,
    } else {
    }
    return
  }
  func.func @transform_0(%arg0: i32) -> (i32, i32, i32) {
    %c0_i32 = arith.constant 0 : i32
    %c0_i32_0 = arith.constant 0 : i32
    %c0_i32_1 = arith.constant 0 : i32
    return %arg0, %c0_i32, %c0_i32_0 : i32, i32, i32
  }
  func.func @transform_1(%arg0: i32) -> (i32, i32) {
    %c0_i32 = arith.constant 0 : i32
    %c0_i32_0 = arith.constant 0 : i32
    return %arg0, %c0_i32 : i32, i32
  }
  func.func @transform_2(%arg0: i32) -> (i32, i32) {
    %c0_i32 = arith.constant 0 : i32
    %c0_i32_0 = arith.constant 0 : i32
    %c0_i32_1 = arith.constant 0 : i32
    return %c0_i32, %c0_i32_0 : i32, i32
  }
  func.func @transform_3(%arg0: i32) -> (i32, i32) {
    %c0_i32 = arith.constant 0 : i32
    %c0_i32_0 = arith.constant 0 : i32
    %c0_i32_1 = arith.constant 0 : i32
    return %c0_i32, %c0_i32_0 : i32, i32
  }
  func.func @transform_4(%arg0: i32) -> (i32, i32) {
    %c0_i32 = arith.constant 0 : i32
    %c0_i32_0 = arith.constant 0 : i32
    %c0_i32_1 = arith.constant 0 : i32
    return %c0_i32, %c0_i32_0 : i32, i32
  }
}

module attributes {stable_mosaic.version = 11 : i64} {
  func.func @kernel(%arg0: i32, %arg1: memref<1x512xf32, #tpu.memory_space<vmem>>, %arg2: memref<1x1xf32, #tpu.memory_space<vmem>>, %arg3: memref<1x512xf32, #tpu.memory_space<vmem>>) attributes {dimension_semantics = [#tpu.dimension_semantics<arbitrary>], iteration_bounds = array<i64: 1>, scalar_prefetch = 0 : i64, scratch_operands = 1 : i64, tpu.core_type = #tpu.core_type<tc>, window_params = [{transform_indices = @transform_0, window_bounds = array<i64: 1, 512>}, {pipeline_mode = #tpu.pipeline_mode<synchronous>, transform_indices = @transform_1, window_bounds = array<i64: 1, 1>}]} {
    %c0_i32 = arith.constant 0 : i32
    %0 = arith.cmpi eq, %arg0, %c0_i32 : i32
    %1 = arith.extui %0 : i1 to i32
    %c0_i32_0 = arith.constant 0 : i32
    %2 = arith.cmpi ne, %1, %c0_i32_0 : i32
    scf.if %2 {
      %cst_11 = arith.constant 0.000000e+00 : f32
      %20 = vector.broadcast %cst_11 : f32 to vector<1x512xf32>
      %c0_12 = arith.constant 0 : index
      %c0_13 = arith.constant 0 : index
      %21 = vector.load %arg3[%c0_12, %c0_13] : memref<1x512xf32, #tpu.memory_space<vmem>>, vector<1x512xf32>
      tpu.vector_store %arg3[%c0_12, %c0_13], %20 {strides = array<i32>} : memref<1x512xf32, #tpu.memory_space<vmem>>, vector<1x512xf32>,
    } else {
    }
    %c0 = arith.constant 0 : index
    %c0_1 = arith.constant 0 : index
    %3 = vector.load %arg1[%c0, %c0_1] : memref<1x512xf32, #tpu.memory_space<vmem>>, vector<1x512xf32>
    %cst = arith.constant 0.000000e+00 : f32
    %4 = vector.broadcast %cst : f32 to vector<1x512xf32>
    %5 = arith.subf %4, %3 : vector<1x512xf32>
    %6 = math.exp %5 : vector<1x512xf32>
    %cst_2 = arith.constant 1.000000e+00 : f32
    %7 = vector.broadcast %cst_2 : f32 to vector<1x512xf32>
    %8 = arith.addf %7, %6 : vector<1x512xf32>
    %cst_3 = arith.constant 1.000000e+00 : f32
    %9 = vector.broadcast %cst_3 : f32 to vector<1x512xf32>
    %10 = arith.divf %9, %8 : vector<1x512xf32>
    %cst_4 = arith.constant 9.99999971E-10 : f32
    %11 = vector.broadcast %cst_4 : f32 to vector<1x512xf32>
    %12 = arith.addf %10, %11 : vector<1x512xf32>
    %13 = math.log %12 : vector<1x512xf32>
    %c0_5 = arith.constant 0 : index
    %c0_6 = arith.constant 0 : index
    %14 = vector.load %arg3[%c0_5, %c0_6] : memref<1x512xf32, #tpu.memory_space<vmem>>, vector<1x512xf32>
    %15 = arith.addf %14, %13 : vector<1x512xf32>
    %c0_7 = arith.constant 0 : index
    %c0_8 = arith.constant 0 : index
    %16 = vector.load %arg3[%c0_7, %c0_8] : memref<1x512xf32, #tpu.memory_space<vmem>>, vector<1x512xf32>
    tpu.vector_store %arg3[%c0_7, %c0_8], %15 {strides = array<i32>} : memref<1x512xf32, #tpu.memory_space<vmem>>, vector<1x512xf32>,
    %c0_i32_9 = arith.constant 0 : i32
    %17 = arith.cmpi eq, %arg0, %c0_i32_9 : i32
    %18 = arith.extui %17 : i1 to i32
    %c0_i32_10 = arith.constant 0 : i32
    %19 = arith.cmpi ne, %18, %c0_i32_10 : i32
    scf.if %19 {
      %c0_11 = arith.constant 0 : index
      %c0_12 = arith.constant 0 : index
      %20 = vector.load %arg3[%c0_11, %c0_12] : memref<1x512xf32, #tpu.memory_space<vmem>>, vector<1x512xf32>
      %21 = vector.shape_cast %20 : vector<1x512xf32> to vector<1x1x512xf32>
      %cst_13 = arith.constant dense<0.000000e+00> : vector<1xf32>
      %22 = vector.multi_reduction <add>, %21, %cst_13 [1, 2] : vector<1x1x512xf32> to vector<1xf32>
      %23 = vector.shape_cast %22 : vector<1xf32> to vector<1x1x1xf32>
      %24 = vector.extract %23[0, 0, 0] : f32 from vector<1x1x1xf32>
      %25 = vector.broadcast %24 : f32 to vector<1x1xf32>
      %c0_14 = arith.constant 0 : index
      %c0_15 = arith.constant 0 : index
      %26 = vector.load %arg2[%c0_14, %c0_15] : memref<1x1xf32, #tpu.memory_space<vmem>>, vector<1x1xf32>
      tpu.vector_store %arg2[%c0_14, %c0_15], %25 {strides = array<i32>} : memref<1x1xf32, #tpu.memory_space<vmem>>, vector<1x1xf32>,
    } else {
    }
    return
  }
  func.func @transform_0(%arg0: i32) -> (i32, i32) {
    %c0_i32 = arith.constant 0 : i32
    %c0_i32_0 = arith.constant 0 : i32
    return %arg0, %c0_i32 : i32, i32
  }
  func.func @transform_1(%arg0: i32) -> (i32, i32) {
    %c0_i32 = arith.constant 0 : i32
    %c0_i32_0 = arith.constant 0 : i32
    %c0_i32_1 = arith.constant 0 : i32
    return %c0_i32, %c0_i32_0 : i32, i32
  }
}

</mosaic_0001>

<bundles_post_ra>
// kernel: _forward_with_adv.6
= control target key start
LH: loop header
LB: loop body
LE: loop exit
PB: predicated region body
PF: predicated region fallthrough
CT: control target
= control target key end

     0   :  { %v105_v2 = vmov 0.0   ;;  %s137_s0 = inlined_call_operand.vmem [shape: f32[3,512], index: 0, kind: input, shape index: {}]   ;;  %s138_s1 = inlined_call_operand.vmem [shape: f32[3,512], index: 1, kind: input, shape index: {}]   ;;  %s139_s2 = inlined_call_operand.hbm [shape: f32[1,1], index: 2, kind: output, shape index: {}]  }
   0x1   :  { %v20_v0 = vld [vmem:[%s137_s0] sm:$0x77]  ;;  %v21_v1 = vld [vmem:[%s137_s0 + $0x8] sm:$0x77]  ;;  %16 = vst [vmem:[#allocation2] sm:$0x77] %v105_v2 }
   0x2   :  { %17 = vst [vmem:[#allocation2 + $0x8] sm:$0x77] %v105_v2  ;;  %v22_v3 = vld [vmem:[%s138_s1] sm:$0x77]  ;;  %v23_v4 = vld [vmem:[%s138_s1 + $0x8] sm:$0x77] }
   0x3   :  { %7 = vsyncpa [#allocation4], 0  ;;  %v24_v5 = vsub.f32 %v20_v0, %v22_v3  ;;  %v25_v6 = vsub.f32 %v21_v1, %v23_v4  ;;  %vm43_vm0 = vcmask 1042432   ;;  %s106_s0 = smov [#allocation3]   ;;  %vm61_vm1 = vcmask 0  }
   0x4   :  { %s69_s1 = sshll.u32 %s106_s0, 4  ;;  %s70_s1 = int_to_ptr.vmem [resolvable:$true] %s69_s1 }
   0x5   :  { %v26_v7 = vand.u32 2147483647, %v24_v5  ;;  %v27_v8 = vand.u32 2147483647, %v25_v6  ;;  %s83_s18 = scalar_lea.vmem %s70_s1, 16  ;;  %s87_s19 = scalar_lea.vmem %s70_s1, 32 }
   0x6   :  { %p84_p0 = scmp.ne.s32.totalorder %s70_s1, %s83_s18  ;;  %p88_p1 = scmp.lt.s32.totalorder %s70_s1, %s70_s1 }
   0x7   :  { %p89_p2 = scmp.lt.s32.totalorder %s87_s19, %s83_s18 }
   0x8   :  { %v18_v9 = vld [vmem:[#allocation2] sm:$0x77] }
   0x9   :  { %v19_v10 = vld [vmem:[#allocation2 + $0x8] sm:$0x77]  ;;  %v28_v11 = vadd.f32 %v26_v7, %v18_v9  ;;  %p90_p3 = por %p89_p2, %p88_p1 }
   0xa   :  { %v29_v12 = vadd.f32 %v27_v8, %v19_v10 }
   0xb   :  { %30 = vst [vmem:[#allocation2] sm:$0x77] %v28_v11  ;;  %p91_p4 = pnand %p90_p3, %p84_p0 }
   0xc   :  { %31 = vst [vmem:[#allocation2 + $0x8] sm:$0x77] %v29_v12 }
  0x12   :  { %v35_v13 = vld [vmem:[#allocation2] sm:$0x77] }
  0x13   :  { %v36_v14 = vld [vmem:[#allocation2 + $0x8] sm:$0x77]  ;;  %v39_v15 = vcombine.high %v35_v13, %v35_v13  ;;  %v44_v17 = vsel %vm43_vm0, %v35_v13, 0.0 }
  0x14   :  { %v40_v16 = vcombine.high %v36_v14, %v36_v14  ;;  %v47_v19 = vsel %vm43_vm0, %v36_v14, 0.0 }
  0x15   :  { %v45_v18 = vsel %vm43_vm0, %v39_v15, 0.0 }
  0x16   :  { %v46_v20 = vadd.f32 %v45_v18, %v44_v17  ;;  %v49_v21 = vsel %vm43_vm0, %v40_v16, 0.0 }
  0x18   :  { %v48_v22 = vadd.f32 %v47_v19, %v46_v20 }
  0x1a   :  { %v50_v23 = vadd.f32 %v49_v21, %v48_v22 }
  0x1c   :  { %51 = vadd.xlane.f32.xlu0 %v50_v23 }
  0xa5   :  { %v52_v24 = vpop.xlane.xlu0 %51 }
  0xa6   :  { %v53_v25 = vrot.slane %v52_v24, 4 }
  0xa8   :  { %v54_v26 = vadd.f32 %v53_v25, %v52_v24 }
  0xaa   :  { %v55_v27 = vrot.slane %v54_v26, 2 }
  0xac   :  { %v56_v28 = vadd.f32 %v55_v27, %v54_v26 }
  0xae   :  { %v57_v29 = vrot.slane %v56_v28, 1 }
  0xb0   :  { %v58_v30 = vadd.f32 %v57_v29, %v56_v28 }
  0xb2   :  { %77 = vpush %v58_v30 }
  0xe3   :  { %s78_s17 = spop %77 }
  0xe4   :  { %v60_v31 = vstv %s78_s17 }
  0xe5   :  { %62 = vst.msk [vmem:[#allocation3] sm:$0x1] %vm61_vm1, %v60_v31 }
  0xe6   :  { %94 = shalt.err (!%p91_p4)
}
  0xe7   :  { %72 = dma.vmem_to_hbm [thread:$0]  %s70_s1, 16, %s139_s2, [#allocation4]  }
  0xe8   :  { %103 = dma.done.wait [#allocation4], 16  }
  0xe9   :  { %104 = vsyncadd [#allocation4], 4294967280 }
  0xea   :  { %76 = vsyncpa [#allocation4], 1 }

// kernel: _forward_with_adv.5
= control target key start
LH: loop header
LB: loop body
LE: loop exit
PB: predicated region body
PF: predicated region fallthrough
CT: control target
= control target key end

     0   :  { %vm48_vm0 = vcmask 130048   ;;  %s689_s0 = inlined_call_operand.vmem [shape: f32[6,8,8], index: 0, kind: input, shape index: {}]   ;;  %s690_s1 = inlined_call_operand.vmem [shape: f32[96,16], index: 1, kind: input, shape index: {}]   ;;  %s691_s2 = inlined_call_operand.vmem [shape: f32[8,16], index: 2, kind: input, shape index: {}]   ;;  %s692_s3 = inlined_call_operand.vmem [shape: f32[16,8], index: 3, kind: input, shape index: {}]   ;;  %s693_s4 = inlined_call_operand.hbm [shape: f32[1,1], index: 4, kind: output, shape index: {}]  }
   0x1   :  { %v27_v0 = vld [vmem:[%s692_s3] sm:$0xff]  ;;  %v28_v1 = vld [vmem:[%s692_s3 + $0x8] sm:$0xff]  ;;  %v32_v5 = vld [vmem:[%s690_s1 + $0x10] sm:$0xff] }
   0x2   :  { %v30_v2 = vld [vmem:[%s690_s1] sm:$0xff]  ;;  %v29_v3 = vpack.c.bf16 %v28_v1, %v27_v0  ;;  %v31_v4 = vld [vmem:[%s690_s1 + $0x8] sm:$0xff]  ;;  %v33_v6 = vld [vmem:[%s690_s1 + $0x18] sm:$0xff] }
   0x3   :  { %v42_v7 = vpack.c.bf16 %v31_v4, %v30_v2  ;;  %v34_v8 = vld [vmem:[%s690_s1 + $0x20] sm:$0xff]  ;;  %v35_v9 = vld [vmem:[%s690_s1 + $0x28] sm:$0xff]  ;;  %v43_v10 = vpack.c.bf16 %v33_v6, %v32_v5 }
   0x4   :  { %497 = vmatprep.subr.bf16.mxu0 %v29_v3  ;;  %v44_v11 = vpack.c.bf16 %v35_v9, %v34_v8 }
   0x5   :  { %498 = vmatpush3.bf16.msra.mxu0 %v29_v3  ;;  %499 = vmatprep.mubr.msk.bf16.mxu0 %vm48_vm0, %v42_v7 }
   0x6   :  { %9 = vsyncpa [#allocation4], 0  ;;  %v36_v12 = vld [vmem:[%s690_s1 + $0x30] sm:$0xff]  ;;  %v37_v13 = vld [vmem:[%s690_s1 + $0x38] sm:$0xff]  ;;  %v574_v21 = vmov 0.0   ;;  %vm575_vm1 = vmmov 0  }
   0x7   :  { %v38_v14 = vld [vmem:[%s690_s1 + $0x40] sm:$0xff]  ;;  %v39_v15 = vld [vmem:[%s690_s1 + $0x48] sm:$0xff]  ;;  %v45_v16 = vpack.c.bf16 %v37_v13, %v36_v12  ;;  %v40_v18 = vld [vmem:[%s690_s1 + $0x50] sm:$0xff]  ;;  %511 = vmatprep.subr.bf16.mxu1 %v574_v21  ;;  %529 = vmatprep.subr.bf16.mxu0 %v574_v21  ;;  %vm23_vm2 = vcmask 64512   ;;  %vm445_vm3 = vcmask 0  }
   0x8   :  { %500 = vmatmul.mubr.msk.bf16.vlgmr.msra.gmra.mxu0 %vm48_vm0, %v43_v10  ;;  %v46_v17 = vpack.c.bf16 %v39_v15, %v38_v14  ;;  %v41_v19 = vld [vmem:[%s690_s1 + $0x58] sm:$0xff]  ;;  %513 = vmatprep.mubr.msk.bf16.mxu1 %vm575_vm1, %v574_v21  ;;  %v25_v25 = vld [vmem:[%s691_s2] sm:$0xff]  ;;  %24 = vst.msk [vmem:[#allocation2] sm:$0xff] %vm23_vm2, %v574_v21  ;;  %v469_v49 = vld [vmem:[%s689_s0 + $0x8] sm:$0xff] }
   0x9   :  { %503 = vmatprep.mubr.msk.bf16.mxu0 %vm48_vm0, %v44_v11  ;;  %v47_v20 = vpack.c.bf16 %v41_v19, %v40_v18  ;;  %v26_v29 = vpack.c.bf16 %v25_v25, %v25_v25  ;;  %v197_v52 = vld [vmem:[%s689_s0] sm:$0xff]  ;;  %v471_v57 = vld [vmem:[%s689_s0 + $0x10] sm:$0xff]  ;;  %v473_v61 = vld [vmem:[%s689_s0 + $0x18] sm:$0xff] }
   0xa   :  { %v477_v7 = vld [vmem:[%s689_s0 + $0x28] sm:$0xff]  ;;  %v475_v11 = vld [vmem:[%s689_s0 + $0x20] sm:$0xff]  ;;  %s576_s0 = smov [#allocation3]  }
   0xb   :  { %s453_s27 = sshll.u32 %s576_s0, 4  ;;  %s454_s27 = int_to_ptr.vmem [resolvable:$true] %s453_s27 }
   0xc   :  { %s552_s29 = scalar_lea.vmem %s454_s27, 16  ;;  %s556_s30 = scalar_lea.vmem %s454_s27, 32 }
   0xd   :  { %p553_p0 = scmp.ne.s32.totalorder %s454_s27, %s552_s29  ;;  %p557_p1 = scmp.lt.s32.totalorder %s454_s27, %s454_s27 }
   0xe   :  { %p558_p2 = scmp.lt.s32.totalorder %s556_s30, %s552_s29 }
  0x10   :  { %504 = vmatmul.mubr.msk.bf16.gmra.mxu0 %vm48_vm0, %v45_v16  ;;  %p559_p3 = por %p558_p2, %p557_p1 }
  0x11   :  { %507 = vmatprep.mubr.msk.bf16.mxu0 %vm48_vm0, %v46_v17 }
  0x12   :  { %p560_p4 = pnand %p559_p3, %p553_p0 }
  0x18   :  { %508 = vmatmul.mubr.msk.bf16.gmra.mxu0 %vm48_vm0, %v47_v20 }
  0x19   :  { %531 = vmatprep.mubr.msk.bf16.mxu0 %vm575_vm1, %v574_v21 }
  0xc8   :  { %v501_v22 = vpop.f32.mrf.mxu0 }
  0xca   :  { %v101_v23 = vpop.f32.mrf.mxu0 }
  0xcc   :  { %v502_v24 = vpop.f32.mrf.mxu0 }
  0xcd   :  { %v149_v31 = vpack.c.bf16 %v502_v24, %v501_v22  ;;  %v426_v24 = vld [vmem:[#allocation2] sm:$0xff] }
  0xce   :  { %v104_v26 = vpop.f32.mrf.mxu0 }
  0xcf   :  { %v148_v27 = vpack.c.bf16 %v104_v26, %v101_v23 }
  0xd0   :  { %v505_v28 = vpop.f32.mrf.mxu0 }
  0xd1   :  { %512 = vmatpush3.bf16.msra.mxu1 %v148_v27 }
  0xd2   :  { %v117_v30 = vpop.f32.mrf.mxu0  ;;  %517 = vmatprep.subr.bf16.mxu1 %v574_v21 }
  0xd4   :  { %v506_v32 = vpop.f32.mrf.mxu0  ;;  %514 = vmatmul.mubr.msk.bf16.vlgmr.msra.gmra.mxu1 %vm48_vm0, %v26_v29 }
  0xd5   :  { %v151_v33 = vpack.c.bf16 %v506_v32, %v505_v28  ;;  %518 = vmatpush3.bf16.msra.mxu1 %v149_v31  ;;  %519 = vmatprep.mubr.msk.bf16.mxu1 %vm575_vm1, %v574_v21 }
  0xd6   :  { %v120_v34 = vpop.f32.mrf.mxu0  ;;  %523 = vmatprep.subr.bf16.mxu1 %v574_v21 }
  0xd7   :  { %530 = vmatpush3.bf16.msra.mxu0 %v151_v33  ;;  %v150_v36 = vpack.c.bf16 %v120_v34, %v117_v30 }
  0xd8   :  { %v509_v35 = vpop.f32.mrf.mxu0  ;;  %541 = vmatprep.subr.bf16.mxu0 %v574_v21 }
  0xda   :  { %v133_v37 = vpop.f32.mrf.mxu0  ;;  %532 = vmatmul.mubr.msk.bf16.vlgmr.msra.gmra.mxu0 %vm48_vm0, %v26_v29 }
  0xdb   :  { %543 = vmatprep.mubr.msk.bf16.mxu0 %vm575_vm1, %v574_v21 }
  0xdc   :  { %520 = vmatmul.mubr.msk.bf16.vlgmr.msra.gmra.mxu1 %vm48_vm0, %v26_v29  ;;  %v510_v38 = vpop.f32.mrf.mxu0 }
  0xdd   :  { %524 = vmatpush3.bf16.msra.mxu1 %v150_v36  ;;  %v153_v39 = vpack.c.bf16 %v510_v38, %v509_v35  ;;  %525 = vmatprep.mubr.msk.bf16.mxu1 %vm575_vm1, %v574_v21 }
  0xde   :  { %v136_v40 = vpop.f32.mrf.mxu0  ;;  %535 = vmatprep.subr.bf16.mxu1 %v574_v21 }
  0xdf   :  { %542 = vmatpush3.bf16.msra.mxu0 %v153_v39  ;;  %v152_v41 = vpack.c.bf16 %v136_v40, %v133_v37 }
  0xe2   :  { %544 = vmatmul.mubr.msk.bf16.vlgmr.msra.gmra.mxu0 %vm48_vm0, %v26_v29 }
  0xe4   :  { %526 = vmatmul.mubr.msk.bf16.vlgmr.msra.gmra.mxu1 %vm48_vm0, %v26_v29 }
  0xe5   :  { %536 = vmatpush3.bf16.msra.mxu1 %v152_v41  ;;  %537 = vmatprep.mubr.msk.bf16.mxu1 %vm575_vm1, %v574_v21 }
  0xec   :  { %538 = vmatmul.mubr.msk.bf16.vlgmr.msra.gmra.mxu1 %vm48_vm0, %v26_v29 }
 0x194   :  { %v191_v42 = vpop.f32.mrf.mxu1 }
 0x195   :  { %v198_v59 = vsub.f32 %v197_v52, %v191_v42 }
 0x196   :  { %v515_v43 = vpop.f32.mrf.mxu1 }
 0x197   :  { %v199_v3 = vand.u32 2147483647, %v198_v59 }
 0x198   :  { %v194_v44 = vpop.f32.mrf.mxu1 }
 0x19a   :  { %v516_v45 = vpop.f32.mrf.mxu1  ;;  %v325_v46 = vpop.f32.mrf.mxu0 }
 0x19b   :  { %v333_v5 = vsub.f32 %v473_v61, %v325_v46 }
 0x19c   :  { %v235_v47 = vpop.f32.mrf.mxu1  ;;  %v533_v48 = vpop.f32.mrf.mxu0 }
 0x19d   :  { %v243_v55 = vsub.f32 %v469_v49, %v235_v47  ;;  %v334_v13 = vand.u32 2147483647, %v333_v5 }
 0x19e   :  { %v521_v50 = vpop.f32.mrf.mxu1  ;;  %v328_v51 = vpop.f32.mrf.mxu0 }
 0x19f   :  { %v244_v63 = vand.u32 2147483647, %v243_v55 }
 0x1a0   :  { %v238_v53 = vpop.f32.mrf.mxu1  ;;  %v534_v54 = vpop.f32.mrf.mxu0 }
 0x1a1   :  { %v245_v9 = vadd.f32 %v244_v63, %v199_v3 }
 0x1a2   :  { %v522_v56 = vpop.f32.mrf.mxu1  ;;  %v415_v58 = vpop.f32.mrf.mxu0 }
 0x1a3   :  { %v423_v14 = vsub.f32 %v477_v7, %v415_v58 }
 0x1a4   :  { %v280_v60 = vpop.f32.mrf.mxu1  ;;  %v545_v62 = vpop.f32.mrf.mxu0 }
 0x1a5   :  { %v288_v0 = vsub.f32 %v471_v57, %v280_v60  ;;  %v424_v20 = vand.u32 2147483647, %v423_v14 }
 0x1a6   :  { %v527_v1 = vpop.f32.mrf.mxu1  ;;  %v418_v2 = vpop.f32.mrf.mxu0 }
 0x1a7   :  { %v289_v4 = vand.u32 2147483647, %v288_v0 }
 0x1a8   :  { %v283_v6 = vpop.f32.mrf.mxu1  ;;  %v546_v8 = vpop.f32.mrf.mxu0 }
 0x1a9   :  { %v290_v12 = vadd.f32 %v289_v4, %v245_v9 }
 0x1aa   :  { %v528_v10 = vpop.f32.mrf.mxu1 }
 0x1ab   :  { %v335_v18 = vadd.f32 %v334_v13, %v290_v12 }
 0x1ac   :  { %v370_v15 = vpop.f32.mrf.mxu1 }
 0x1ad   :  { %v378_v16 = vsub.f32 %v475_v11, %v370_v15 }
 0x1ae   :  { %v539_v17 = vpop.f32.mrf.mxu1 }
 0x1af   :  { %v379_v19 = vand.u32 2147483647, %v378_v16 }
 0x1b0   :  { %v373_v21 = vpop.f32.mrf.mxu1 }
 0x1b1   :  { %v380_v22 = vadd.f32 %v379_v19, %v335_v18 }
 0x1b2   :  { %v540_v23 = vpop.f32.mrf.mxu1 }
 0x1b3   :  { %v425_v25 = vadd.f32 %v424_v20, %v380_v22 }
 0x1b5   :  { %v427_v26 = vadd.f32 %v426_v24, %v425_v25 }
 0x1b7   :  { %429 = vst.msk [vmem:[#allocation2] sm:$0xff] %vm23_vm2, %v427_v26 }
 0x1be   :  { %v433_v27 = vld [vmem:[#allocation2] sm:$0xff] }
 0x1bf   :  { %v434_v28 = vsel %vm23_vm2, %v433_v27, 0.0 }
 0x1c0   :  { %435 = vadd.xlane.f32.xlu0 %v434_v28 }
 0x249   :  { %v436_v29 = vpop.xlane.xlu0 %435 }
 0x24a   :  { %v437_v30 = vrot.slane %v436_v29, 4 }
 0x24c   :  { %v438_v31 = vadd.f32 %v437_v30, %v436_v29 }
 0x24e   :  { %v439_v32 = vrot.slane %v438_v31, 2 }
 0x250   :  { %v440_v33 = vadd.f32 %v439_v32, %v438_v31 }
 0x252   :  { %v441_v34 = vrot.slane %v440_v33, 1 }
 0x254   :  { %v442_v35 = vadd.f32 %v441_v34, %v440_v33 }
 0x256   :  { %547 = vpush %v442_v35 }
 0x287   :  { %s548_s28 = spop %547 }
 0x288   :  { %v444_v36 = vstv %s548_s28 }
 0x289   :  { %446 = vst.msk [vmem:[#allocation3] sm:$0x1] %vm445_vm3, %v444_v36 }
 0x28a   :  { %563 = shalt.err (!%p560_p4)
}
 0x28b   :  { %456 = dma.vmem_to_hbm [thread:$0]  %s454_s27, 16, %s693_s4, [#allocation4]  }
 0x28c   :  { %572 = dma.done.wait [#allocation4], 16  }
 0x28d   :  { %573 = vsyncadd [#allocation4], 4294967280 }
 0x28e   :  { %460 = vsyncpa [#allocation4], 1 }

// kernel: _forward_with_adv.7
= control target key start
LH: loop header
LB: loop body
LE: loop exit
PB: predicated region body
PF: predicated region fallthrough
CT: control target
= control target key end

     0   :  { %v13_v0 = vlaneseq  ;;  %s144_s0 = inlined_call_operand.vmem [shape: f32[1,512], index: 0, kind: input, shape index: {}]   ;;  %s145_s1 = inlined_call_operand.hbm [shape: f32[1,1], index: 1, kind: output, shape index: {}]  }
   0x1   :  { %v18_v1 = vld [vmem:[%s144_s0] sm:$0xf] }
   0x2   :  { %6 = vsyncpa [#allocation4], 0  ;;  %v19_v2 = vsub.f32 0.0, %v18_v1  ;;  %vm15_vm0 = vcmp.lt.s32.totalorder %v13_v0, 512  ;;  %v126_v3 = vmov 0.0   ;;  %v41_v13 = vshrl.u32 %v13_v0, 7 }
   0x3   :  { %17 = vst.msk [vmem:[#allocation2] sm:$0xf] %vm15_vm0, %v126_v3  ;;  %vm60_vm1 = vcmask 1040384   ;;  %s127_s0 = smov [#allocation3]   ;;  %vm78_vm2 = vcmask 0  }
   0x4   :  { %v20_v4 = vmul.f32 1.442695, %v19_v2  ;;  %v42_v14 = vsub.s32 0, %v41_v13  ;;  %v46_v15 = vsub.s32 1, %v41_v13  ;;  %v50_v16 = vsub.s32 2, %v41_v13  ;;  %s86_s8 = sshll.u32 %s127_s0, 4  ;;  %s87_s8 = int_to_ptr.vmem [resolvable:$true] %s86_s8 }
   0x5   :  { %v54_v17 = vsub.s32 3, %v41_v13  ;;  %s104_s10 = scalar_lea.vmem %s87_s8, 16  ;;  %s108_s11 = scalar_lea.vmem %s87_s8, 32 }
   0x6   :  { %98 = vpow2.f32 %v20_v4  ;;  %p105_p0 = scmp.ne.s32.totalorder %s87_s8, %s104_s10  ;;  %p109_p1 = scmp.lt.s32.totalorder %s87_s8, %s87_s8 }
   0x7   :  { %p110_p2 = scmp.lt.s32.totalorder %s108_s11, %s104_s10 }
   0x9   :  { %p111_p3 = por %p110_p2, %p109_p1 }
   0xa   :  { %v28_v10 = vld [vmem:[#allocation2] sm:$0xf] }
   0xb   :  { %p112_p4 = pnand %p111_p3, %p105_p0 }
  0x13   :  { %v99_v5 = vpop.eup %98 }
  0x14   :  { %v22_v6 = vadd.f32 1.0, %v99_v5 }
  0x16   :  { %100 = vrcp.f32 %v22_v6 }
  0x23   :  { %v101_v7 = vpop.eup %100 }
  0x24   :  { %v25_v8 = vadd.f32 1e-09, %v101_v7 }
  0x26   :  { %102 = vlog2.f32 %v25_v8 }
  0x33   :  { %v103_v9 = vpop.eup %102 }
  0x34   :  { %v27_v11 = vmul.f32 0.6931472, %v103_v9 }
  0x36   :  { %v29_v12 = vadd.f32 %v28_v10, %v27_v11 }
  0x38   :  { %34 = vst.msk [vmem:[#allocation2] sm:$0xf] %vm15_vm0, %v29_v12 }
  0x3f   :  { %v38_v18 = vld [vmem:[#allocation2] sm:$0xf] }
  0x40   :  { %v43_v19 = vrot.slane %v38_v18, %v42_v14  ;;  %v47_v20 = vrot.slane %v38_v18, %v46_v15  ;;  %v51_v21 = vrot.slane %v38_v18, %v50_v16  ;;  %v55_v22 = vrot.slane %v38_v18, %v54_v17 }
  0x42   :  { %v61_v23 = vsel %vm60_vm1, %v43_v19, 0.0  ;;  %v62_v24 = vsel %vm60_vm1, %v47_v20, 0.0  ;;  %v64_v25 = vsel %vm60_vm1, %v51_v21, 0.0  ;;  %v66_v27 = vsel %vm60_vm1, %v55_v22, 0.0 }
  0x43   :  { %v63_v26 = vadd.f32 %v62_v24, %v61_v23 }
  0x45   :  { %v65_v28 = vadd.f32 %v64_v25, %v63_v26 }
  0x47   :  { %v67_v29 = vadd.f32 %v66_v27, %v65_v28 }
  0x49   :  { %68 = vadd.xlane.f32.xlu0 %v67_v29 }
  0xd2   :  { %v69_v30 = vpop.xlane.xlu0 %68 }
  0xd3   :  { %v70_v31 = vrot.slane %v69_v30, 4 }
  0xd5   :  { %v71_v32 = vadd.f32 %v70_v31, %v69_v30 }
  0xd7   :  { %v72_v33 = vrot.slane %v71_v32, 2 }
  0xd9   :  { %v73_v34 = vadd.f32 %v72_v33, %v71_v32 }
  0xdb   :  { %v74_v35 = vrot.slane %v73_v34, 1 }
  0xdd   :  { %v75_v36 = vadd.f32 %v74_v35, %v73_v34 }
  0xdf   :  { %94 = vpush %v75_v36 }
 0x110   :  { %s95_s9 = spop %94 }
 0x111   :  { %v77_v37 = vstv %s95_s9 }
 0x112   :  { %79 = vst.msk [vmem:[#allocation3] sm:$0x1] %vm78_vm2, %v77_v37 }
 0x113   :  { %115 = shalt.err (!%p112_p4)
}
 0x114   :  { %89 = dma.vmem_to_hbm [thread:$0]  %s87_s8, 16, %s145_s1, [#allocation4]  }
 0x115   :  { %124 = dma.done.wait [#allocation4], 16  }
 0x116   :  { %125 = vsyncadd [#allocation4], 4294967280 }
 0x117   :  { %93 = vsyncpa [#allocation4], 1 }

// kernel: _forward_with_adv.4
= control target key start
LH: loop header
LB: loop body
LE: loop exit
PB: predicated region body
PF: predicated region fallthrough
CT: control target
= control target key end

     0   :  { %vm48_vm0 = vcmask 130048   ;;  %s689_s0 = inlined_call_operand.vmem [shape: f32[6,4,4], index: 0, kind: input, shape index: {}]   ;;  %s690_s1 = inlined_call_operand.vmem [shape: f32[96,16], index: 1, kind: input, shape index: {}]   ;;  %s691_s2 = inlined_call_operand.vmem [shape: f32[4,16], index: 2, kind: input, shape index: {}]   ;;  %s692_s3 = inlined_call_operand.vmem [shape: f32[16,4], index: 3, kind: input, shape index: {}]   ;;  %s693_s4 = inlined_call_operand.hbm [shape: f32[1,1], index: 4, kind: output, shape index: {}]  }
   0x1   :  { %v27_v0 = vld [vmem:[%s692_s3] sm:$0xff]  ;;  %v28_v1 = vld [vmem:[%s692_s3 + $0x8] sm:$0xff]  ;;  %v32_v5 = vld [vmem:[%s690_s1 + $0x10] sm:$0xff] }
   0x2   :  { %v30_v2 = vld [vmem:[%s690_s1] sm:$0xff]  ;;  %v29_v3 = vpack.c.bf16 %v28_v1, %v27_v0  ;;  %v31_v4 = vld [vmem:[%s690_s1 + $0x8] sm:$0xff]  ;;  %v33_v6 = vld [vmem:[%s690_s1 + $0x18] sm:$0xff] }
   0x3   :  { %v42_v7 = vpack.c.bf16 %v31_v4, %v30_v2  ;;  %v34_v8 = vld [vmem:[%s690_s1 + $0x20] sm:$0xff]  ;;  %v35_v9 = vld [vmem:[%s690_s1 + $0x28] sm:$0xff]  ;;  %v43_v10 = vpack.c.bf16 %v33_v6, %v32_v5 }
   0x4   :  { %497 = vmatprep.subr.bf16.mxu0 %v29_v3  ;;  %v44_v11 = vpack.c.bf16 %v35_v9, %v34_v8 }
   0x5   :  { %498 = vmatpush3.bf16.msra.mxu0 %v29_v3  ;;  %499 = vmatprep.mubr.msk.bf16.mxu0 %vm48_vm0, %v42_v7 }
   0x6   :  { %9 = vsyncpa [#allocation4], 0  ;;  %v36_v12 = vld [vmem:[%s690_s1 + $0x30] sm:$0xff]  ;;  %v37_v13 = vld [vmem:[%s690_s1 + $0x38] sm:$0xff]  ;;  %v574_v21 = vmov 0.0   ;;  %vm575_vm1 = vmmov 0  }
   0x7   :  { %v38_v14 = vld [vmem:[%s690_s1 + $0x40] sm:$0xff]  ;;  %v39_v15 = vld [vmem:[%s690_s1 + $0x48] sm:$0xff]  ;;  %v45_v16 = vpack.c.bf16 %v37_v13, %v36_v12  ;;  %v40_v18 = vld [vmem:[%s690_s1 + $0x50] sm:$0xff]  ;;  %511 = vmatprep.subr.bf16.mxu1 %v574_v21  ;;  %529 = vmatprep.subr.bf16.mxu0 %v574_v21  ;;  %vm23_vm2 = vcmask 27648   ;;  %vm445_vm3 = vcmask 0  }
   0x8   :  { %500 = vmatmul.mubr.msk.bf16.vlgmr.msra.gmra.mxu0 %vm48_vm0, %v43_v10  ;;  %v46_v17 = vpack.c.bf16 %v39_v15, %v38_v14  ;;  %v41_v19 = vld [vmem:[%s690_s1 + $0x58] sm:$0xff]  ;;  %513 = vmatprep.mubr.msk.bf16.mxu1 %vm575_vm1, %v574_v21  ;;  %v25_v25 = vld [vmem:[%s691_s2] sm:$0xf]  ;;  %24 = vst.msk [vmem:[#allocation2] sm:$0xf] %vm23_vm2, %v574_v21 }
   0x9   :  { %503 = vmatprep.mubr.msk.bf16.mxu0 %vm48_vm0, %v44_v11  ;;  %v47_v20 = vpack.c.bf16 %v41_v19, %v40_v18  ;;  %v26_v29 = vpack.c.bf16 %v25_v25, %v25_v25  ;;  %v469_v49 = vld [vmem:[%s689_s0 + $0x4] sm:$0xf]  ;;  %v197_v52 = vld [vmem:[%s689_s0] sm:$0xf]  ;;  %v471_v57 = vld [vmem:[%s689_s0 + $0x8] sm:$0xf] }
   0xa   :  { %v473_v61 = vld [vmem:[%s689_s0 + $0xc] sm:$0xf]  ;;  %v477_v7 = vld [vmem:[%s689_s0 + $0x14] sm:$0xf]  ;;  %v475_v11 = vld [vmem:[%s689_s0 + $0x10] sm:$0xf] }
   0xb   :  { %s576_s0 = smov [#allocation3]  }
   0xc   :  { %s453_s27 = sshll.u32 %s576_s0, 4  ;;  %s454_s27 = int_to_ptr.vmem [resolvable:$true] %s453_s27 }
   0xd   :  { %s552_s29 = scalar_lea.vmem %s454_s27, 16  ;;  %s556_s30 = scalar_lea.vmem %s454_s27, 32 }
   0xe   :  { %p553_p0 = scmp.ne.s32.totalorder %s454_s27, %s552_s29  ;;  %p557_p1 = scmp.lt.s32.totalorder %s454_s27, %s454_s27 }
   0xf   :  { %p558_p2 = scmp.lt.s32.totalorder %s556_s30, %s552_s29 }
  0x10   :  { %504 = vmatmul.mubr.msk.bf16.gmra.mxu0 %vm48_vm0, %v45_v16 }
  0x11   :  { %507 = vmatprep.mubr.msk.bf16.mxu0 %vm48_vm0, %v46_v17  ;;  %p559_p3 = por %p558_p2, %p557_p1 }
  0x13   :  { %p560_p4 = pnand %p559_p3, %p553_p0 }
  0x18   :  { %508 = vmatmul.mubr.msk.bf16.gmra.mxu0 %vm48_vm0, %v47_v20 }
  0x19   :  { %531 = vmatprep.mubr.msk.bf16.mxu0 %vm575_vm1, %v574_v21 }
  0xc8   :  { %v501_v22 = vpop.f32.mrf.mxu0 }
  0xca   :  { %v101_v23 = vpop.f32.mrf.mxu0 }
  0xcc   :  { %v502_v24 = vpop.f32.mrf.mxu0 }
  0xcd   :  { %v149_v31 = vpack.c.bf16 %v502_v24, %v501_v22  ;;  %v426_v24 = vld [vmem:[#allocation2] sm:$0xf] }
  0xce   :  { %v104_v26 = vpop.f32.mrf.mxu0 }
  0xcf   :  { %v148_v27 = vpack.c.bf16 %v104_v26, %v101_v23 }
  0xd0   :  { %v505_v28 = vpop.f32.mrf.mxu0 }
  0xd1   :  { %512 = vmatpush3.bf16.msra.mxu1 %v148_v27 }
  0xd2   :  { %v117_v30 = vpop.f32.mrf.mxu0  ;;  %517 = vmatprep.subr.bf16.mxu1 %v574_v21 }
  0xd4   :  { %v506_v32 = vpop.f32.mrf.mxu0  ;;  %514 = vmatmul.mubr.msk.bf16.vlgmr.msra.gmra.mxu1 %vm48_vm0, %v26_v29 }
  0xd5   :  { %v151_v33 = vpack.c.bf16 %v506_v32, %v505_v28  ;;  %518 = vmatpush3.bf16.msra.mxu1 %v149_v31  ;;  %519 = vmatprep.mubr.msk.bf16.mxu1 %vm575_vm1, %v574_v21 }
  0xd6   :  { %v120_v34 = vpop.f32.mrf.mxu0  ;;  %523 = vmatprep.subr.bf16.mxu1 %v574_v21 }
  0xd7   :  { %530 = vmatpush3.bf16.msra.mxu0 %v151_v33  ;;  %v150_v36 = vpack.c.bf16 %v120_v34, %v117_v30 }
  0xd8   :  { %v509_v35 = vpop.f32.mrf.mxu0  ;;  %541 = vmatprep.subr.bf16.mxu0 %v574_v21 }
  0xda   :  { %v133_v37 = vpop.f32.mrf.mxu0  ;;  %532 = vmatmul.mubr.msk.bf16.vlgmr.msra.gmra.mxu0 %vm48_vm0, %v26_v29 }
  0xdb   :  { %543 = vmatprep.mubr.msk.bf16.mxu0 %vm575_vm1, %v574_v21 }
  0xdc   :  { %520 = vmatmul.mubr.msk.bf16.vlgmr.msra.gmra.mxu1 %vm48_vm0, %v26_v29  ;;  %v510_v38 = vpop.f32.mrf.mxu0 }
  0xdd   :  { %524 = vmatpush3.bf16.msra.mxu1 %v150_v36  ;;  %v153_v39 = vpack.c.bf16 %v510_v38, %v509_v35  ;;  %525 = vmatprep.mubr.msk.bf16.mxu1 %vm575_vm1, %v574_v21 }
  0xde   :  { %v136_v40 = vpop.f32.mrf.mxu0  ;;  %535 = vmatprep.subr.bf16.mxu1 %v574_v21 }
  0xdf   :  { %542 = vmatpush3.bf16.msra.mxu0 %v153_v39  ;;  %v152_v41 = vpack.c.bf16 %v136_v40, %v133_v37 }
  0xe2   :  { %544 = vmatmul.mubr.msk.bf16.vlgmr.msra.gmra.mxu0 %vm48_vm0, %v26_v29 }
  0xe4   :  { %526 = vmatmul.mubr.msk.bf16.vlgmr.msra.gmra.mxu1 %vm48_vm0, %v26_v29 }
  0xe5   :  { %536 = vmatpush3.bf16.msra.mxu1 %v152_v41  ;;  %537 = vmatprep.mubr.msk.bf16.mxu1 %vm575_vm1, %v574_v21 }
  0xec   :  { %538 = vmatmul.mubr.msk.bf16.vlgmr.msra.gmra.mxu1 %vm48_vm0, %v26_v29 }
 0x194   :  { %v191_v42 = vpop.f32.mrf.mxu1 }
 0x195   :  { %v198_v59 = vsub.f32 %v197_v52, %v191_v42 }
 0x196   :  { %v515_v43 = vpop.f32.mrf.mxu1 }
 0x197   :  { %v199_v3 = vand.u32 2147483647, %v198_v59 }
 0x198   :  { %v194_v44 = vpop.f32.mrf.mxu1 }
 0x19a   :  { %v516_v45 = vpop.f32.mrf.mxu1  ;;  %v325_v46 = vpop.f32.mrf.mxu0 }
 0x19b   :  { %v333_v5 = vsub.f32 %v473_v61, %v325_v46 }
 0x19c   :  { %v235_v47 = vpop.f32.mrf.mxu1  ;;  %v533_v48 = vpop.f32.mrf.mxu0 }
 0x19d   :  { %v243_v55 = vsub.f32 %v469_v49, %v235_v47  ;;  %v334_v13 = vand.u32 2147483647, %v333_v5 }
 0x19e   :  { %v521_v50 = vpop.f32.mrf.mxu1  ;;  %v328_v51 = vpop.f32.mrf.mxu0 }
 0x19f   :  { %v244_v63 = vand.u32 2147483647, %v243_v55 }
 0x1a0   :  { %v238_v53 = vpop.f32.mrf.mxu1  ;;  %v534_v54 = vpop.f32.mrf.mxu0 }
 0x1a1   :  { %v245_v9 = vadd.f32 %v244_v63, %v199_v3 }
 0x1a2   :  { %v522_v56 = vpop.f32.mrf.mxu1  ;;  %v415_v58 = vpop.f32.mrf.mxu0 }
 0x1a3   :  { %v423_v14 = vsub.f32 %v477_v7, %v415_v58 }
 0x1a4   :  { %v280_v60 = vpop.f32.mrf.mxu1  ;;  %v545_v62 = vpop.f32.mrf.mxu0 }
 0x1a5   :  { %v288_v0 = vsub.f32 %v471_v57, %v280_v60  ;;  %v424_v20 = vand.u32 2147483647, %v423_v14 }
 0x1a6   :  { %v527_v1 = vpop.f32.mrf.mxu1  ;;  %v418_v2 = vpop.f32.mrf.mxu0 }
 0x1a7   :  { %v289_v4 = vand.u32 2147483647, %v288_v0 }
 0x1a8   :  { %v283_v6 = vpop.f32.mrf.mxu1  ;;  %v546_v8 = vpop.f32.mrf.mxu0 }
 0x1a9   :  { %v290_v12 = vadd.f32 %v289_v4, %v245_v9 }
 0x1aa   :  { %v528_v10 = vpop.f32.mrf.mxu1 }
 0x1ab   :  { %v335_v18 = vadd.f32 %v334_v13, %v290_v12 }
 0x1ac   :  { %v370_v15 = vpop.f32.mrf.mxu1 }
 0x1ad   :  { %v378_v16 = vsub.f32 %v475_v11, %v370_v15 }
 0x1ae   :  { %v539_v17 = vpop.f32.mrf.mxu1 }
 0x1af   :  { %v379_v19 = vand.u32 2147483647, %v378_v16 }
 0x1b0   :  { %v373_v21 = vpop.f32.mrf.mxu1 }
 0x1b1   :  { %v380_v22 = vadd.f32 %v379_v19, %v335_v18 }
 0x1b2   :  { %v540_v23 = vpop.f32.mrf.mxu1 }
 0x1b3   :  { %v425_v25 = vadd.f32 %v424_v20, %v380_v22 }
 0x1b5   :  { %v427_v26 = vadd.f32 %v426_v24, %v425_v25 }
 0x1b7   :  { %429 = vst.msk [vmem:[#allocation2] sm:$0xf] %vm23_vm2, %v427_v26 }
 0x1be   :  { %v433_v27 = vld [vmem:[#allocation2] sm:$0xf] }
 0x1bf   :  { %v434_v28 = vsel %vm23_vm2, %v433_v27, 0.0 }
 0x1c0   :  { %435 = vadd.xlane.f32.xlu0 %v434_v28 }
 0x249   :  { %v436_v29 = vpop.xlane.xlu0 %435 }
 0x24a   :  { %v437_v30 = vrot.slane %v436_v29, 4 }
 0x24c   :  { %v438_v31 = vadd.f32 %v437_v30, %v436_v29 }
 0x24e   :  { %v439_v32 = vrot.slane %v438_v31, 2 }
 0x250   :  { %v440_v33 = vadd.f32 %v439_v32, %v438_v31 }
 0x252   :  { %v441_v34 = vrot.slane %v440_v33, 1 }
 0x254   :  { %v442_v35 = vadd.f32 %v441_v34, %v440_v33 }
 0x256   :  { %547 = vpush %v442_v35 }
 0x287   :  { %s548_s28 = spop %547 }
 0x288   :  { %v444_v36 = vstv %s548_s28 }
 0x289   :  { %446 = vst.msk [vmem:[#allocation3] sm:$0x1] %vm445_vm3, %v444_v36 }
 0x28a   :  { %563 = shalt.err (!%p560_p4)
}
 0x28b   :  { %456 = dma.vmem_to_hbm [thread:$0]  %s454_s27, 16, %s693_s4, [#allocation4]  }
 0x28c   :  { %572 = dma.done.wait [#allocation4], 16  }
 0x28d   :  { %573 = vsyncadd [#allocation4], 4294967280 }
 0x28e   :  { %460 = vsyncpa [#allocation4], 1 }

</bundles_post_ra>
